<compile_context>
chip_gen: v6e
topology: v6e:2x2x1
jax: 0.10.0
libtpu: 0.0.40
codegen_flags: <defaults>
</compile_context>

<pallas_src>
import functools

import jax
import jax.numpy as jnp
from jax.experimental import pallas as pl
from jax.experimental.pallas import tpu as pltpu

NUM_BOND_TYPE = 6
NUM_BOND_DIRECTION = 3
NUM_ATOM_TYPE = 120
NUM_CHIRALITY = 3
BN_EPS = 1e-5
LANE = 128
N_ALIGN = 128  # node rows padded to a lane-dense / MXU-tile-aligned multiple


def _round_up(x, m):
    return (x + m - 1) // m * m


def _gin_fused_kernel(a_ref, eaggr_ref, w1_ref, w2_ref, vec_ref, out_ref,
                      *, num_layer, n_true):
    layer = pl.program_id(0)

    # Layer 0: zero-seed the resident carried block.  The layer-0 contribution
    # A @ x is already folded into eaggr[0] by the wrapper, so A @ 0 + eaggr[0]
    # reproduces the original layer-0 aggregation.
    @pl.when(layer == 0)
    def _():
        out_ref[...] = jnp.zeros_like(out_ref)

    d_pad = out_ref.shape[1]
    h = out_ref[...]                                     # bf16 [N_pad, D_pad]

    # --- neighbor aggregation: aggr = A @ h + edge_aggr (bf16 MXU, f32 acc) ---
    aggr = (jnp.dot(a_ref[...], h, preferred_element_type=jnp.float32)
            + eaggr_ref[...].astype(jnp.float32))

    # --- packed per-layer vectors: row0=b1, row1=b2, row2=gamma, row3=beta ---
    b1 = vec_ref[0:1, :]                                 # [1, H_pad]
    b2 = vec_ref[1:2, :d_pad]                            # [1, D_pad]
    gamma = vec_ref[2:3, :d_pad]
    beta = vec_ref[3:4, :d_pad]

    # --- GINConv MLP: Linear(D, 2D) -> ReLU -> Linear(2D, D) ---
    z = jnp.dot(aggr.astype(jnp.bfloat16), w1_ref[...],
                preferred_element_type=jnp.float32) + b1
    z = jnp.maximum(z, 0.0)
    h2 = jnp.dot(z.astype(jnp.bfloat16), w2_ref[...],
                 preferred_element_type=jnp.float32) + b2

    # --- BatchNorm1d over node axis, single pass (training-mode biased stats).
    #     Padded rows masked out; divide by the true node count. ---
    n_pad = h2.shape[0]
    row_mask = (jax.lax.broadcasted_iota(jnp.int32, (n_pad, 1), 0)
                < n_true).astype(jnp.float32)
    inv_n = 1.0 / float(n_true)
    hm = h2 * row_mask
    mean = jnp.sum(hm, axis=0, keepdims=True) * inv_n
    ex2 = jnp.sum(hm * h2, axis=0, keepdims=True) * inv_n
    var = jnp.maximum(ex2 - mean * mean, 0.0)            # clamp cancellation
    hbn = (h2 - mean) * jax.lax.rsqrt(var + BN_EPS) * gamma + beta

    # --- ReLU on all but the last layer (dropout p=0 is a no-op) ---
    @pl.when(layer != num_layer - 1)
    def _():
        out_ref[...] = jnp.maximum(hbn, 0.0).astype(out_ref.dtype)

    @pl.when(layer == num_layer - 1)
    def _():
        out_ref[...] = hbn.astype(out_ref.dtype)


def gin_fused_forward(A, eaggr, W1, W2, vecs, *, n_true):
    """One pallas_call over all layers; grid axis = layer index (sequential)."""
    num_layer = W1.shape[0]
    n_pad = A.shape[0]
    d_pad = W2.shape[2]
    h_pad = W1.shape[2]

    kernel = functools.partial(_gin_fused_kernel,
                               num_layer=num_layer, n_true=n_true)

    const2 = lambda l: (0, 0)      # resident across layers
    stack3 = lambda l: (l, 0, 0)   # per-layer stacked operand

    # --- VMEM budget: real footprint (assume double-buffering) + f32 temps + headroom,
    #     capped below the physical VMEM of the current chip. ---
    footprint = 2 * (n_pad * n_pad * 2          # A (bf16)
                     + n_pad * d_pad * 2        # carried h / out (bf16)
                     + n_pad * d_pad * 2        # eaggr[l] (bf16)
                     + d_pad * h_pad * 2        # W1[l] (bf16)
                     + h_pad * d_pad * 2        # W2[l] (bf16)
                     + 8 * h_pad * 4)           # packed vectors (f32)
    temps = n_pad * (2 * d_pad + h_pad) * 4     # aggr, h2 (D) + z (H) in f32
    try:
        vmem_cap = pltpu.get_tpu_info().vmem_capacity_bytes
    except Exception:
        vmem_cap = 64 * 1024 * 1024             # conservative (v7x per-TC)
    vmem_limit = int(min(0.85 * vmem_cap,
                         max(footprint + temps + (8 << 20), 32 << 20)))

    return pl.pallas_call(
        kernel,
        out_shape=jax.ShapeDtypeStruct((n_pad, d_pad), jnp.bfloat16),
        grid=(num_layer,),
        in_specs=[
            pl.BlockSpec((n_pad, n_pad), const2),         # A (bf16, resident)
            pl.BlockSpec((None, n_pad, d_pad), stack3),   # eaggr[l] (bf16)
            pl.BlockSpec((None, d_pad, h_pad), stack3),   # W1[l] (bf16)
            pl.BlockSpec((None, h_pad, d_pad), stack3),   # W2[l] (bf16)
            pl.BlockSpec((None, 8, h_pad), stack3),       # packed b1/b2/gamma/beta (f32)
        ],
        out_specs=pl.BlockSpec((n_pad, d_pad), const2),   # h carried across layers
        compiler_params=pltpu.CompilerParams(
            dimension_semantics=("arbitrary",),
            vmem_limit_bytes=vmem_limit),
    )(A, eaggr, W1, W2, vecs)


def xavier_uniform(key, shape):
    fan_in, fan_out = shape[0], shape[1]
    limit = (6.0 / (fan_in + fan_out)) ** 0.5
    return jax.random.uniform(key, shape, jnp.float32, -limit, limit)


def init_gin_params(key, num_layer, emb_dim):
    if num_layer < 2:
        raise ValueError("Number of GNN layers must be greater than 1.")
    keys = jax.random.split(key, 2 + 4 * num_layer)
    params = {
        "x_emb1": xavier_uniform(keys[0], (NUM_ATOM_TYPE, emb_dim)),
        "x_emb2": xavier_uniform(keys[1], (NUM_CHIRALITY, emb_dim)),
        "layers": [],
    }
    k = 2
    for _ in range(num_layer):
        layer = {
            "edge_emb1": xavier_uniform(keys[k + 0], (NUM_BOND_TYPE, emb_dim)),
            "edge_emb2": xavier_uniform(keys[k + 1], (NUM_BOND_DIRECTION, emb_dim)),
            "W1": xavier_uniform(keys[k + 2], (emb_dim, 2 * emb_dim)),
            "b1": jnp.zeros((1, 2 * emb_dim), jnp.float32),
            "W2": xavier_uniform(keys[k + 3], (2 * emb_dim, emb_dim)),
            "b2": jnp.zeros((1, emb_dim), jnp.float32),
            "gamma": jnp.ones((1, emb_dim), jnp.float32),
            "beta": jnp.zeros((1, emb_dim), jnp.float32),
        }
        params["layers"].append(layer)
        k += 4
    return params


def gin_forward(params, x_ids, edge_index, edge_attr):
    """x_ids: [N, 2] int32, edge_index: [2, E] int32, edge_attr: [E, 2] int32."""
    n = x_ids.shape[0]
    emb_dim = params["x_emb1"].shape[1]

    d_pad = _round_up(emb_dim, LANE)
    h_hidden = 2 * emb_dim
    h_pad = _round_up(h_hidden, LANE)
    n_pad = _round_up(n, N_ALIGN)

    # --- node embeddings (glue: gather from embedding tables) ---
    x = (params["x_emb1"][x_ids[:, 0]] + params["x_emb2"][x_ids[:, 1]]
         ).astype(jnp.float32)

    # --- add self loops (GINConv.forward) ---
    self_loops = jnp.arange(n, dtype=edge_index.dtype)
    src = jnp.concatenate([edge_index[0], self_loops])
    tgt = jnp.concatenate([edge_index[1], self_loops])
    self_loop_attr = jnp.zeros((n, 2), edge_attr.dtype).at[:, 0].set(4)
    edge_attr_full = jnp.concatenate([edge_attr, self_loop_attr], axis=0)

    # --- dense adjacency with multiplicities, A[t, s] = #edges s->t (incl self loop) ---
    A_f32 = jnp.zeros((n_pad, n_pad), jnp.float32).at[tgt, src].add(1.0)
    A = A_f32.astype(jnp.bfloat16)      # exact for small integer counts

    # --- layer-0 node-feature aggregation folded into eaggr[0] (x0 is NOT a kernel
    #     operand; the carried block is zero-seeded inside the kernel at layer 0) ---
    x_p = jnp.zeros((n_pad, d_pad), jnp.float32).at[:n, :emb_dim].set(x)
    x_contrib = A_f32 @ x_p

    # --- per-layer edge aggregates + stacked, zero-padded weights ---
    eaggr_l, W1_l, W2_l, vec_l = [], [], [], []
    for li, lp in enumerate(params["layers"]):
        edge_emb = (lp["edge_emb1"][edge_attr_full[:, 0]]
                    + lp["edge_emb2"][edge_attr_full[:, 1]]).astype(jnp.float32)
        ea = jnp.zeros((n, emb_dim), jnp.float32).at[tgt].add(edge_emb)
        ea_p = jnp.zeros((n_pad, d_pad), jnp.float32).at[:n, :emb_dim].set(ea)
        if li == 0:
            ea_p = ea_p + x_contrib
        eaggr_l.append(ea_p.astype(jnp.bfloat16))

        W1_l.append(jnp.zeros((d_pad, h_pad), jnp.float32)
                    .at[:emb_dim, :h_hidden].set(lp["W1"]).astype(jnp.bfloat16))
        W2_l.append(jnp.zeros((h_pad, d_pad), jnp.float32)
                    .at[:h_hidden, :emb_dim].set(lp["W2"]).astype(jnp.bfloat16))

        vec = jnp.zeros((8, h_pad), jnp.float32)
        vec = vec.at[0, :h_hidden].set(lp["b1"][0])
        vec = vec.at[1, :emb_dim].set(lp["b2"][0])
        vec = vec.at[2, :emb_dim].set(lp["gamma"][0])
        vec = vec.at[3, :emb_dim].set(lp["beta"][0])
        vec_l.append(vec)

    out = gin_fused_forward(
        A,
        jnp.stack(eaggr_l), jnp.stack(W1_l), jnp.stack(W2_l), jnp.stack(vec_l),
        n_true=n)

    return out[:n, :emb_dim].astype(jnp.float32)


if __name__ == "__main__":
    key = jax.random.PRNGKey(0)
    k_param, k_x1, k_x2, k_src, k_tgt, k_ea1, k_ea2 = jax.random.split(key, 7)

    num_layer = 2
    emb_dim = 32
    n_nodes = 16
    n_edges = 32

    params = init_gin_params(k_param, num_layer, emb_dim)

    # synthetic graph inputs
    x_ids = jnp.stack(
        [jax.random.randint(k_x1, (n_nodes,), 0, NUM_ATOM_TYPE),
         jax.random.randint(k_x2, (n_nodes,), 0, NUM_CHIRALITY)], axis=1
    ).astype(jnp.int32)
    edge_index = jnp.stack(
        [jax.random.randint(k_src, (n_edges,), 0, n_nodes),
         jax.random.randint(k_tgt, (n_edges,), 0, n_nodes)], axis=0
    ).astype(jnp.int32)
    edge_attr = jnp.stack(
        [jax.random.randint(k_ea1, (n_edges,), 0, NUM_BOND_TYPE),
         jax.random.randint(k_ea2, (n_edges,), 0, NUM_BOND_DIRECTION)], axis=1
    ).astype(jnp.int32)

    out = gin_forward(params, x_ids, edge_index, edge_attr)
    out = jax.block_until_ready(out)
    assert out.shape == (n_nodes, emb_dim)
    assert jnp.all(jnp.isfinite(out))
    print("KERNEL_OK")
</pallas_src>

<mosaic_0001>
module attributes {stable_mosaic.version = 11 : i64} {
  func.func @_gin_fused_kernel(%arg0: i32, %arg1: memref<128x128xbf16, #tpu.memory_space<vmem>>, %arg2: memref<1x128x128xbf16, #tpu.memory_space<vmem>>, %arg3: memref<1x128x128xbf16, #tpu.memory_space<vmem>>, %arg4: memref<1x128x128xbf16, #tpu.memory_space<vmem>>, %arg5: memref<1x8x128xf32, #tpu.memory_space<vmem>>, %arg6: memref<128x128xbf16, #tpu.memory_space<vmem>>) attributes {dimension_semantics = [#tpu.dimension_semantics<arbitrary>], iteration_bounds = array<i64: 2>, scalar_prefetch = 0 : i64, scratch_operands = 0 : i64, tpu.core_type = #tpu.core_type<tc>, window_params = [{pipeline_mode = #tpu.pipeline_mode<synchronous>, transform_indices = @transform_0, window_bounds = array<i64: 128, 128>}, {transform_indices = @transform_1, window_bounds = array<i64: 1, 128, 128>}, {transform_indices = @transform_2, window_bounds = array<i64: 1, 128, 128>}, {transform_indices = @transform_3, window_bounds = array<i64: 1, 128, 128>}, {transform_indices = @transform_4, window_bounds = array<i64: 1, 8, 128>}, {pipeline_mode = #tpu.pipeline_mode<synchronous>, transform_indices = @transform_5, window_bounds = array<i64: 128, 128>}]} {
    %c0_i32 = arith.constant 0 : i32
    %0 = arith.cmpi eq, %arg0, %c0_i32 : i32
    %1 = arith.extui %0 : i1 to i32
    %c0_i32_0 = arith.constant 0 : i32
    %2 = arith.cmpi ne, %1, %c0_i32_0 : i32
    scf.if %2 {
      %cst_34 = arith.constant 0.000000e+00 : bf16
      %69 = vector.broadcast %cst_34 : bf16 to vector<128x128xbf16>
      %c0_35 = arith.constant 0 : index
      %c0_36 = arith.constant 0 : index
      %70 = vector.load %arg6[%c0_35, %c0_36] : memref<128x128xbf16, #tpu.memory_space<vmem>>, vector<128x128xbf16>
      tpu.vector_store %arg6[%c0_35, %c0_36], %69 {strides = array<i32>} : memref<128x128xbf16, #tpu.memory_space<vmem>>, vector<128x128xbf16>,
    } else {
    }
    %c0 = arith.constant 0 : index
    %c0_1 = arith.constant 0 : index
    %3 = vector.load %arg6[%c0, %c0_1] : memref<128x128xbf16, #tpu.memory_space<vmem>>, vector<128x128xbf16>
    %c0_2 = arith.constant 0 : index
    %c0_3 = arith.constant 0 : index
    %4 = vector.load %arg1[%c0_2, %c0_3] : memref<128x128xbf16, #tpu.memory_space<vmem>>, vector<128x128xbf16>
    %cst = arith.constant dense<0.000000e+00> : vector<128x128xf32>
    %5 = tpu.matmul %4, %3, %cst {dimension_numbers = #tpu.dot_dimension_numbers<[1], [0], [0], [1], [0, 0, 1, 1], [], []>} : vector<128x128xbf16>, vector<128x128xbf16>, vector<128x128xf32> -> vector<128x128xf32>
    %c0_4 = arith.constant 0 : index
    %c0_5 = arith.constant 0 : index
    %c0_6 = arith.constant 0 : index
    %6 = vector.load %arg2[%c0_4, %c0_5, %c0_6] : memref<1x128x128xbf16, #tpu.memory_space<vmem>>, vector<1x128x128xbf16>
    %7 = vector.shape_cast %6 : vector<1x128x128xbf16> to vector<128x128xbf16>
    %8 = arith.extf %7 : vector<128x128xbf16> to vector<128x128xf32>
    %9 = arith.addf %5, %8 : vector<128x128xf32>
    %c0_7 = arith.constant 0 : index
    %c0_8 = arith.constant 0 : index
    %c0_9 = arith.constant 0 : index
    %10 = vector.load %arg5[%c0_7, %c0_8, %c0_9] : memref<1x8x128xf32, #tpu.memory_space<vmem>>, vector<1x1x128xf32>
    %11 = vector.shape_cast %10 : vector<1x1x128xf32> to vector<1x128xf32>
    %c0_10 = arith.constant 0 : index
    %c1 = arith.constant 1 : index
    %c0_11 = arith.constant 0 : index
    %12 = vector.load %arg5[%c0_10, %c1, %c0_11] : memref<1x8x128xf32, #tpu.memory_space<vmem>>, vector<1x1x128xf32>
    %13 = vector.shape_cast %12 : vector<1x1x128xf32> to vector<1x128xf32>
    %c0_12 = arith.constant 0 : index
    %c2 = arith.constant 2 : index
    %c0_13 = arith.constant 0 : index
    %14 = vector.load %arg5[%c0_12, %c2, %c0_13] : memref<1x8x128xf32, #tpu.memory_space<vmem>>, vector<1x1x128xf32>
    %15 = vector.shape_cast %14 : vector<1x1x128xf32> to vector<1x128xf32>
    %c0_14 = arith.constant 0 : index
    %c3 = arith.constant 3 : index
    %c0_15 = arith.constant 0 : index
    %16 = vector.load %arg5[%c0_14, %c3, %c0_15] : memref<1x8x128xf32, #tpu.memory_space<vmem>>, vector<1x1x128xf32>
    %17 = vector.shape_cast %16 : vector<1x1x128xf32> to vector<1x128xf32>
    %18 = arith.truncf %9 : vector<128x128xf32> to vector<128x128xbf16>
    %c0_16 = arith.constant 0 : index
    %c0_17 = arith.constant 0 : index
    %c0_18 = arith.constant 0 : index
    %19 = vector.load %arg3[%c0_16, %c0_17, %c0_18] : memref<1x128x128xbf16, #tpu.memory_space<vmem>>, vector<1x128x128xbf16>
    %20 = vector.shape_cast %19 : vector<1x128x128xbf16> to vector<128x128xbf16>
    %cst_19 = arith.constant dense<0.000000e+00> : vector<128x128xf32>
    %21 = tpu.matmul %18, %20, %cst_19 {dimension_numbers = #tpu.dot_dimension_numbers<[1], [0], [0], [1], [0, 0, 1, 1], [], []>} : vector<128x128xbf16>, vector<128x128xbf16>, vector<128x128xf32> -> vector<128x128xf32>
    %22 = vector.broadcast %11 : vector<1x128xf32> to vector<128x128xf32>
    %23 = arith.addf %21, %22 : vector<128x128xf32>
    %cst_20 = arith.constant 0.000000e+00 : f32
    %24 = vector.broadcast %cst_20 : f32 to vector<128x128xf32>
    %25 = arith.maximumf %23, %24 : vector<128x128xf32>
    %26 = arith.truncf %25 : vector<128x128xf32> to vector<128x128xbf16>
    %c0_21 = arith.constant 0 : index
    %c0_22 = arith.constant 0 : index
    %c0_23 = arith.constant 0 : index
    %27 = vector.load %arg4[%c0_21, %c0_22, %c0_23] : memref<1x128x128xbf16, #tpu.memory_space<vmem>>, vector<1x128x128xbf16>
    %28 = vector.shape_cast %27 : vector<1x128x128xbf16> to vector<128x128xbf16>
    %cst_24 = arith.constant dense<0.000000e+00> : vector<128x128xf32>
    %29 = tpu.matmul %26, %28, %cst_24 {dimension_numbers = #tpu.dot_dimension_numbers<[1], [0], [0], [1], [0, 0, 1, 1], [], []>} : vector<128x128xbf16>, vector<128x128xbf16>, vector<128x128xf32> -> vector<128x128xf32>
    %30 = vector.broadcast %13 : vector<1x128xf32> to vector<128x128xf32>
    %31 = arith.addf %29, %30 : vector<128x128xf32>
    %32 = tpu.iota {dimensions = array<i32: 0>} : vector<128x1xi32>
    %c16_i32 = arith.constant 16 : i32
    %33 = vector.broadcast %c16_i32 : i32 to vector<128x1xi32>
    %34 = arith.cmpi slt, %32, %33 : vector<128x1xi32>
    %35 = arith.extui %34 : vector<128x1xi1> to vector<128x1xi32>
    %36 = arith.sitofp %35 : vector<128x1xi32> to vector<128x1xf32>
    %37 = vector.broadcast %36 : vector<128x1xf32> to vector<128x128xf32>
    %38 = arith.mulf %31, %37 : vector<128x128xf32>
    %cst_25 = arith.constant dense<0.000000e+00> : vector<128xf32>
    %39 = vector.multi_reduction <add>, %38, %cst_25 [0] : vector<128x128xf32> to vector<128xf32>
    %40 = vector.shape_cast %39 : vector<128xf32> to vector<1x128xf32>
    %cst_26 = arith.constant 6.250000e-02 : f32
    %41 = vector.broadcast %cst_26 : f32 to vector<1x128xf32>
    %42 = arith.mulf %40, %41 : vector<1x128xf32>
    %43 = arith.mulf %38, %31 : vector<128x128xf32>
    %cst_27 = arith.constant dense<0.000000e+00> : vector<128xf32>
    %44 = vector.multi_reduction <add>, %43, %cst_27 [0] : vector<128x128xf32> to vector<128xf32>
    %45 = vector.shape_cast %44 : vector<128xf32> to vector<1x128xf32>
    %cst_28 = arith.constant 6.250000e-02 : f32
    %46 = vector.broadcast %cst_28 : f32 to vector<1x128xf32>
    %47 = arith.mulf %45, %46 : vector<1x128xf32>
    %48 = arith.mulf %42, %42 : vector<1x128xf32>
    %49 = arith.subf %47, %48 : vector<1x128xf32>
    %cst_29 = arith.constant 0.000000e+00 : f32
    %50 = vector.broadcast %cst_29 : f32 to vector<1x128xf32>
    %51 = arith.maximumf %49, %50 : vector<1x128xf32>
    %52 = vector.broadcast %42 : vector<1x128xf32> to vector<128x128xf32>
    %53 = arith.subf %31, %52 : vector<128x128xf32>
    %cst_30 = arith.constant 9.99999974E-6 : f32
    %54 = vector.broadcast %cst_30 : f32 to vector<1x128xf32>
    %55 = arith.addf %51, %54 : vector<1x128xf32>
    %56 = math.rsqrt %55 : vector<1x128xf32>
    %57 = vector.broadcast %56 : vector<1x128xf32> to vector<128x128xf32>
    %58 = arith.mulf %53, %57 : vector<128x128xf32>
    %59 = vector.broadcast %15 : vector<1x128xf32> to vector<128x128xf32>
    %60 = arith.mulf %58, %59 : vector<128x128xf32>
    %61 = vector.broadcast %17 : vector<1x128xf32> to vector<128x128xf32>
    %62 = arith.addf %60, %61 : vector<128x128xf32>
    %c1_i32 = arith.constant 1 : i32
    %63 = arith.cmpi ne, %arg0, %c1_i32 : i32
    %64 = arith.extui %63 : i1 to i32
    %c0_i32_31 = arith.constant 0 : i32
    %65 = arith.cmpi ne, %64, %c0_i32_31 : i32
    scf.if %65 {
      %cst_34 = arith.constant 0.000000e+00 : f32
      %69 = vector.broadcast %cst_34 : f32 to vector<128x128xf32>
      %70 = arith.maximumf %62, %69 : vector<128x128xf32>
      %71 = arith.truncf %70 : vector<128x128xf32> to vector<128x128xbf16>
      %c0_35 = arith.constant 0 : index
      %c0_36 = arith.constant 0 : index
      %72 = vector.load %arg6[%c0_35, %c0_36] : memref<128x128xbf16, #tpu.memory_space<vmem>>, vector<128x128xbf16>
      tpu.vector_store %arg6[%c0_35, %c0_36], %71 {strides = array<i32>} : memref<128x128xbf16, #tpu.memory_space<vmem>>, vector<128x128xbf16>,
    } else {
    }
    %c1_i32_32 = arith.constant 1 : i32
    %66 = arith.cmpi eq, %arg0, %c1_i32_32 : i32
    %67 = arith.extui %66 : i1 to i32
    %c0_i32_33 = arith.constant 0 : i32
    %68 = arith.cmpi ne, %67, %c0_i32_33 : i32
    scf.if %68 {
      %69 = arith.truncf %62 : vector<128x128xf32> to vector<128x128xbf16>
      %c0_34 = arith.constant 0 : index
      %c0_35 = arith.constant 0 : index
      %70 = vector.load %arg6[%c0_34, %c0_35] : memref<128x128xbf16, #tpu.memory_space<vmem>>, vector<128x128xbf16>
      tpu.vector_store %arg6[%c0_34, %c0_35], %69 {strides = array<i32>} : memref<128x128xbf16, #tpu.memory_space<vmem>>, vector<128x128xbf16>,
    } else {
    }
    return
  }
  func.func @transform_0(%arg0: i32) -> (i32, i32) {
    %c0_i32 = arith.constant 0 : i32
    %c0_i32_0 = arith.constant 0 : i32
    %c0_i32_1 = arith.constant 0 : i32
    return %c0_i32, %c0_i32_0 : i32, i32
  }
  func.func @transform_1(%arg0: i32) -> (i32, i32, i32) {
    %c0_i32 = arith.constant 0 : i32
    %c0_i32_0 = arith.constant 0 : i32
    %c0_i32_1 = arith.constant 0 : i32
    return %arg0, %c0_i32, %c0_i32_0 : i32, i32, i32
  }
  func.func @transform_2(%arg0: i32) -> (i32, i32, i32) {
    %c0_i32 = arith.constant 0 : i32
    %c0_i32_0 = arith.constant 0 : i32
    %c0_i32_1 = arith.constant 0 : i32
    return %arg0, %c0_i32, %c0_i32_0 : i32, i32, i32
  }
  func.func @transform_3(%arg0: i32) -> (i32, i32, i32) {
    %c0_i32 = arith.constant 0 : i32
    %c0_i32_0 = arith.constant 0 : i32
    %c0_i32_1 = arith.constant 0 : i32
    return %arg0, %c0_i32, %c0_i32_0 : i32, i32, i32
  }
  func.func @transform_4(%arg0: i32) -> (i32, i32, i32) {
    %c0_i32 = arith.constant 0 : i32
    %c0_i32_0 = arith.constant 0 : i32
    %c0_i32_1 = arith.constant 0 : i32
    return %arg0, %c0_i32, %c0_i32_0 : i32, i32, i32
  }
  func.func @transform_5(%arg0: i32) -> (i32, i32) {
    %c0_i32 = arith.constant 0 : i32
    %c0_i32_0 = arith.constant 0 : i32
    %c0_i32_1 = arith.constant 0 : i32
    return %c0_i32, %c0_i32_0 : i32, i32
  }
}

</mosaic_0001>

<bundles_post_ra>
// kernel: tpu_custom_call.1
= control target key start
LH: loop header
LB: loop body
LE: loop exit
PB: predicated region body
PF: predicated region fallthrough
CT: control target
= control target key end

     0   :  { %s2733_s0 = inlined_call_operand.hbm [shape: bf16[128,128], index: 0, kind: input, shape index: {}]   ;;  %s2734_s1 = inlined_call_operand.hbm [shape: bf16[2,128,128], index: 1, kind: input, shape index: {}]   ;;  %s2735_s2 = inlined_call_operand.hbm [shape: bf16[2,128,128], index: 2, kind: input, shape index: {}]   ;;  %s2736_s3 = inlined_call_operand.hbm [shape: bf16[2,128,128], index: 3, kind: input, shape index: {}]   ;;  %s2737_s4 = inlined_call_operand.hbm [shape: f32[2,8,128], index: 4, kind: input, shape index: {}]   ;;  %s2738_s5 = inlined_call_operand.hbm [shape: bf16[128,128], index: 5, kind: output, shape index: {}]  }
   0x1   :  { %2748 = sst [smem:[#allocation16_spill]] %s2734_s1 }
   0x2   :  { %2749 = sst [smem:[#allocation17_spill]] %s2735_s2 }
   0x3   :  { %10 = vsyncpa [#allocation3], 0 }
   0x4   :  { %11 = vsyncpa [#allocation6], 0 }
   0x5   :  { %13 = vsyncpa [#allocation6 + $0x1], 0 }
   0x6   :  { %14 = vsyncpa [#allocation9], 0 }
   0x7   :  { %16 = vsyncpa [#allocation9 + $0x1], 0 }
   0x8   :  { %17 = vsyncpa [#allocation4], 0  ;;  %s2323_s18 = smov 0   ;;  %s2325_s19 = smov 0  }
   0x9   :  { %s2327_s20 = smov 0   ;;  %s2329_s21 = smov 0  }
   0xa LB: > { %s2344_s22 = sadd.s32 1, %s2280_s21   ;;  %s51_s23 = sadd.s32 1, %s2276_s20  ;;  %s2280_s21 = sphi %s2329_s21, %s2769_s21   ;;  %s2276_s20 = sphi %s2327_s20, %s2768_s20   ;;  %s2272_s19 = sphi %s2325_s19, %s2767_s19   ;;  %s2268_s18 = sphi %s2323_s18, %s2766_s18  }
   0xb   : > { %s48_s24 = ssub.s32 %s2280_s21, %s2344_s22  ;;  %p58_p0 = scmp.ne.s32.totalorder %s2276_s20, %s2272_s19 }
   0xc   : > { %p49_p1 = scmp.eq.s32.totalorder %s48_s24, 0  ;;  %p59_p2 = scmp.eq.s32.totalorder %s2280_s21, 0 }
   0xd   : > { %p1995_p4 = scmp.lt.s32.totalorder %s2280_s21, 2  ;;  %s200_s26 = sand.u32 1, %s2280_s21  }
   0xe   : > { %s2353_s25 = scalar_select %p49_p1, %s2276_s20, %s51_s23  }
   0xf   : > { %p60_p3 = por %p59_p2, %p58_p0  ;;  %s2739_s27 = sand.u32 1, %s2276_s20  }
  0x10   : > { %s2360_s28 = sshll.u32 %s2739_s27, 6  ;;  %s2363_s29 = sshll.u32 %s2280_s21, 10 }
  0x11   : > { %s2750_s1 = sld [smem:[#allocation16_spill]]  ;;  %s204_s8 = scalar_lea.vmem [#allocation5], %s2360_s28 }
  0x12   : > { %s211_s9 = sshll.u32 %s204_s8, 4  ;;  %p2372_p5 = pnand %p1995_p4, %p60_p3  ;;  %s2376_s9 = int_to_ptr.vmem [resolvable:$true] %s211_s9 }
  0x13   : > { %s2380_s11 = scalar_lea.sflag [#allocation6], %s200_s26 }
  0x14   : > { %p2386_p7 = pneg %p2372_p5 }
  0x17   : > { %s2369_s7 = scalar_lea.hbm %s2750_s1, %s2363_s29  ;;  %s2077_s16 = scalar_lea.hbm %s2750_s1, 2048 }
  0x18   : > { %s2072_s12 = scalar_lea.hbm %s2369_s7, 1024  ;;  %p2078_p10 = scmp.lt.s32.totalorder %s2369_s7, %s2750_s1 }
  0x19   : > { %p2073_p6 = scmp.ne.s32.totalorder %s2369_s7, %s2072_s12  ;;  %p2079_p11 = scmp.lt.s32.totalorder %s2077_s16, %s2072_s12 }
  0x1b   : > { %p2075_p8 = pnand %p2386_p7, %p2073_p6  ;;  %p2080_p12 = por %p2079_p11, %p2078_p10 }
  0x1d   : > { %p2076_p9 = pneg %p2075_p8 }
  0x1f   : > { %p2081_p13 = pnand %p2080_p12, %p2076_p9 }
  0x21   : > { %2084 = shalt.err (!%p2081_p13)
}
  0x22   : > { %s2085_s24 = scalar_lea.vmem %s2376_s9, 1024  ;;  %s2282_s30 = smov [#allocation5]  }
  0x23   : > { %p2086_p0 = scmp.ne.s32.totalorder %s2376_s9, %s2085_s24  ;;  %s2090_s6 = sshll.u32 %s2282_s30, 4  ;;  %s2091_s6 = int_to_ptr.vmem [resolvable:$false] %s2090_s6 }
  0x24   : > { %s2092_s8 = scalar_lea.vmem %s2091_s6, 2048  ;;  %p2093_p3 = scmp.lt.s32.totalorder %s2376_s9, %s2091_s6 }
  0x25   : > { %p2088_p1 = pnand %p2086_p0, %p2386_p7  ;;  %p2094_p4 = scmp.lt.s32.totalorder %s2092_s8, %s2085_s24 }
  0x27   : > { %p2089_p2 = pneg %p2088_p1  ;;  %p2095_p6 = por %p2094_p4, %p2093_p3 }
  0x29   : > { %p2096_p8 = pnand %p2095_p6, %p2089_p2 }
  0x2b   : > { %2099 = shalt.err (!%p2096_p8)
}
  0x2c   : > { %s2740_s12 = smov 64   ;;  %s2744_s14 = smov 4  }
  0x2d   : > { %1984 = dma.hbm_to_vmem [thread:$0]  (!%p2372_p5), %s2369_s7, 1024, %s2376_s9, %s2380_s11, %s2740_s12, %s2740_s12, %s2744_s14  }
  0x2e   : > { %s2416_s17 = scalar_lea.hbm %s2736_s3, %s2363_s29  ;;  %s246_s23 = scalar_lea.vmem [#allocation8], %s2360_s28 }
  0x2f   : > { %s253_s24 = sshll.u32 %s246_s23, 4  ;;  %s2423_s30 = scalar_lea.sflag [#allocation9], %s200_s26  ;;  %s2419_s24 = int_to_ptr.vmem [resolvable:$true] %s253_s24 }
  0x30   : > { %s2100_s6 = scalar_lea.hbm %s2416_s17, 1024  ;;  %s2105_s8 = scalar_lea.hbm %s2736_s3, 2048 }
  0x31   : > { %p2101_p9 = scmp.ne.s32.totalorder %s2416_s17, %s2100_s6  ;;  %p2106_p12 = scmp.lt.s32.totalorder %s2416_s17, %s2736_s3 }
  0x32   : > { %p2107_p13 = scmp.lt.s32.totalorder %s2105_s8, %s2100_s6 }
  0x33   : > { %p2103_p10 = pnand %p2101_p9, %p2386_p7 }
  0x34   : > { %p2108_p0 = por %p2107_p13, %p2106_p12 }
  0x35   : > { %p2104_p11 = pneg %p2103_p10 }
  0x37   : > { %p2109_p1 = pnand %p2108_p0, %p2104_p11 }
  0x39   : > { %2112 = shalt.err (!%p2109_p1)
}
  0x3a   : > { %s2113_s26 = scalar_lea.vmem %s2419_s24, 1024  ;;  %s2285_s23 = smov [#allocation8]  }
  0x3b   : > { %p2114_p2 = scmp.ne.s32.totalorder %s2419_s24, %s2113_s26  ;;  %s2118_s7 = sshll.u32 %s2285_s23, 4  ;;  %s2119_s7 = int_to_ptr.vmem [resolvable:$false] %s2118_s7 }
  0x3c   : > { %s2120_s9 = scalar_lea.vmem %s2119_s7, 2048  ;;  %p2121_p6 = scmp.lt.s32.totalorder %s2419_s24, %s2119_s7 }
  0x3d   : > { %p2116_p3 = pnand %p2114_p2, %p2386_p7  ;;  %p2122_p8 = scmp.lt.s32.totalorder %s2120_s9, %s2113_s26 }
  0x3f   : > { %p2117_p4 = pneg %p2116_p3  ;;  %p2123_p9 = por %p2122_p8, %p2121_p6 }
  0x41   : > { %p2124_p10 = pnand %p2123_p9, %p2117_p4 }
  0x43   : > { %2127 = shalt.err (!%p2124_p10)
}
  0x44   : > { %1990 = dma.hbm_to_vmem [thread:$0]  (!%p2372_p5), %s2416_s17, 1024, %s2419_s24, %s2423_s30, %s2740_s12, %s2740_s12, %s2744_s14  }
  0x45   : > { %s2450_s6 = sadd.s32 4294967295, %s2280_s21   ;;  %p64_p11 = scmp.ne.s32.totalorder %s2272_s19, %s2268_s18 }
  0x46   : > { %p2742_p12 = scmp.eq.s32.totalorder %s2450_s6, 0  ;;  %p1538_p13 = scmp.ge.s32.totalorder %s2280_s21, 1 }
  0x47   : > { %p174_p0 = scmp.lt.s32.totalorder %s2280_s21, 3  ;;  %s2286_s17 = smov [#allocation2]  }
  0x48   : > { %p2459_p1 = por %p2742_p12, %p64_p11  ;;  %s186_s24 = sshll.u32 %s2286_s17, 4  ;;  %s2470_s24 = int_to_ptr.vmem [resolvable:$true] %s186_s24 }
  0x49   : > { %p2464_p3 = pnand %p1538_p13, %p174_p0  ;;  %s2755_s2 = sld [smem:[#allocation17_spill]] }
  0x4a   : > { %s2753_s8 = scalar_select %p2459_p1, 1, 0 }
  0x4b   : > { %s2754_s15 = scalar_select %p2464_p3, 1, 0 }
  0x4c   : > { %p1977_p4 = pneg %p2464_p3  ;;  %s225_s23 = scalar_lea.vmem [#allocation7], %s2360_s28 }
  0x4d   : > { %s232_s7 = sshll.u32 %s225_s23, 4  ;;  %s233_s7 = int_to_ptr.vmem [resolvable:$true] %s232_s7 }
  0x4e   : > { %p2481_p6 = pnand %p1977_p4, %p2742_p12 }
  0x4f   : > { %s2476_s26 = scalar_lea.hbm %s2755_s2, %s2363_s29  ;;  %s2133_s29 = scalar_lea.hbm %s2755_s2, 2048 }
  0x50   : > { %s2756_s9 = scalar_select %p2481_p6, 1, 0 }
  0x51   : > { %s2128_s17 = scalar_lea.hbm %s2476_s26, 1024  ;;  %p2134_p11 = scmp.lt.s32.totalorder %s2476_s26, %s2755_s2 }
  0x52   : > { %p2129_p8 = scmp.ne.s32.totalorder %s2476_s26, %s2128_s17  ;;  %p2135_p13 = scmp.lt.s32.totalorder %s2133_s29, %s2128_s17 }
  0x54   : > { %p2131_p9 = pnand %p2129_p8, %p2386_p7  ;;  %p2136_p0 = por %p2135_p13, %p2134_p11 }
  0x56   : > { %p2132_p10 = pneg %p2131_p9 }
  0x58   : > { %p2137_p4 = pnand %p2136_p0, %p2132_p10 }
  0x5a   : > { %2140 = shalt.err (!%p2137_p4)
}
  0x5b   : > { %s2141_s28 = scalar_lea.vmem %s233_s7, 1024  ;;  %s2287_s23 = smov [#allocation7]  }
  0x5c   : > { %p2142_p2 = scmp.ne.s32.totalorder %s233_s7, %s2141_s28  ;;  %s2146_s14 = sshll.u32 %s2287_s23, 4  ;;  %s2147_s14 = int_to_ptr.vmem [resolvable:$false] %s2146_s14 }
  0x5d   : > { %s2148_s1 = scalar_lea.vmem %s2147_s14, 2048  ;;  %p2149_p8 = scmp.lt.s32.totalorder %s233_s7, %s2147_s14 }
  0x5e   : > { %p2144_p12 = pnand %p2142_p2, %p2386_p7  ;;  %p2150_p9 = scmp.lt.s32.totalorder %s2148_s1, %s2141_s28 }
  0x60   : > { %p2145_p1 = pneg %p2144_p12  ;;  %p2151_p3 = por %p2150_p9, %p2149_p8 }
  0x62   : > { %p2152_p6 = pnand %p2151_p3, %p2145_p1 }
  0x64   : > { %2155 = shalt.err (!%p2152_p6)
}
  0x65   : > { %s2757_s27 = smov 4   ;;  %s2758_s12 = smov 64  }
  0x66   : > { %1987 = dma.hbm_to_vmem [thread:$0]  (!%p2372_p5), %s2476_s26, 1024, %s233_s7, %s2380_s11, %s2758_s12, %s2758_s12, %s2757_s27  }
  0x67   : > { %s2759_s17 = sand.u32 1, %s2276_s20   ;;  %p2760_p12 = scmp.ne.s32.totalorder %s2756_s9, 0 }
  0x68   : > { %s1550_s18 = sshll.u32 %s2759_s17, 3  ;;  %s2167_s1 = scalar_lea.vmem %s2470_s24, 1024 }
  0x69   : > { %p2158_p2 = pneg %p2760_p12  ;;  %p2168_p1 = scmp.ne.s32.totalorder %s2470_s24, %s2167_s1 }
  0x6a   : > { %p2175_p10 = scmp.lt.s32.totalorder %s2470_s24, %s2470_s24  ;;  %p2176_p11 = scmp.lt.s32.totalorder %s2167_s1, %s2167_s1 }
  0x6b   : > { %p2170_p3 = pnand %p2168_p1, %p2158_p2 }
  0x6c   : > { %p2177_p13 = por %p2176_p11, %p2175_p10 }
  0x6d   : > { %p2171_p6 = pneg %p2170_p3 }
  0x6f   : > { %p2178_p0 = pnand %p2177_p13, %p2171_p6 }
  0x71   : > { %2181 = shalt.err (!%p2178_p0)
}
  0x72   : > { %1980 = dma.hbm_to_vmem [thread:$0]  (!%p2760_p12), %s2733_s0, 1024, %s2470_s24, [#allocation3], %s2758_s12, %s2758_s12, %s2757_s27  }
  0x73   : > { %s1551_s26 = sshll.u32 %s2280_s21, 7  ;;  %s267_s28 = scalar_lea.vmem [#allocation10], %s1550_s18 }
  0x74   : > { %s272_s16 = scalar_lea.hbm %s2737_s4, %s1551_s26  ;;  %s274_s23 = sshll.u32 %s267_s28, 4  ;;  %s275_s23 = int_to_ptr.vmem [resolvable:$true] %s274_s23 }
  0x75   : > { %s2182_s17 = scalar_lea.hbm %s272_s16, 128  ;;  %s2187_s11 = scalar_lea.hbm %s2737_s4, 256 }
  0x76   : > { %p2183_p4 = scmp.ne.s32.totalorder %s272_s16, %s2182_s17  ;;  %p2188_p12 = scmp.lt.s32.totalorder %s272_s16, %s2737_s4 }
  0x77   : > { %p2189_p2 = scmp.lt.s32.totalorder %s2187_s11, %s2182_s17 }
  0x78   : > { %p2185_p8 = pnand %p2183_p4, %p2386_p7 }
  0x79   : > { %p2190_p1 = por %p2189_p2, %p2188_p12 }
  0x7a   : > { %p2186_p9 = pneg %p2185_p8 }
  0x7c   : > { %p2191_p3 = pnand %p2190_p1, %p2186_p9 }
  0x7e   : > { %2194 = shalt.err (!%p2191_p3)
}
  0x7f   : > { %s2195_s21 = scalar_lea.vmem %s275_s23, 128  ;;  %s2288_s24 = smov [#allocation10]  }
  0x80   : > { %p2196_p6 = scmp.ne.s32.totalorder %s275_s23, %s2195_s21  ;;  %s2200_s27 = sshll.u32 %s2288_s24, 4  ;;  %s2201_s27 = int_to_ptr.vmem [resolvable:$false] %s2200_s27 }
  0x81   : > { %s2202_s12 = scalar_lea.vmem %s2201_s27, 256  ;;  %p2203_p13 = scmp.lt.s32.totalorder %s275_s23, %s2201_s27 }
  0x82   : > { %p2198_p10 = pnand %p2196_p6, %p2386_p7  ;;  %p2204_p0 = scmp.lt.s32.totalorder %s2202_s12, %s2195_s21 }
  0x84   : > { %p2199_p11 = pneg %p2198_p10  ;;  %p2205_p4 = por %p2204_p0, %p2203_p13 }
  0x86   : > { %p2206_p8 = pnand %p2205_p4, %p2199_p11 }
  0x88   : > { %2209 = shalt.err (!%p2206_p8)
}
  0x89   : > { %1993 = dma.hbm_to_vmem [thread:$0]  (!%p2372_p5), %s272_s16, 128, %s275_s23, %s2423_s30  }
  0x8a   : > { %p2761_p9 = scmp.ne.s32.totalorder %s2754_s15, 0 }
  0x8b   : > { %p2762_p12 = scmp.eq.s32.totalorder (!%p2761_p9), %s2450_s6, 0 }
  0x8c   : > { %283 = sbr.rel (%p2761_p9) target bundleno = 939 (0x3ab), region = 40 }
  0x91   : > { %2251 = dma.done.wait (%p2762_p12), [#allocation3], 1024   ;;  %p2763_p7 = pmov %p2762_p12 }
  0x92   : > { %s289_s2 = sand.u32 1, %s2450_s6   ;;  %s291_s13 = sand.u32 1, %s2272_s19  }
  0x93   : > { %2253 = vsyncadd (%p2763_p7), [#allocation3], 4294966272  ;;  %s1554_s18 = sshll.u32 %s291_s13, 6  ;;  %s290_s26 = scalar_lea.sflag [#allocation6], %s289_s2 }
  0x94   : > { %s2547_s7 = scalar_lea.vmem [#allocation5], %s1554_s18  ;;  %p2764_p2 = scmp.ne.s32.totalorder %s2753_s8, 0 }
  0x96   : > { %2255 = dma.done.wait (%p2764_p2), %s290_s26, 2048  }
  0x97   : > { %2257 = vsyncadd (%p2764_p2), %s290_s26, 4294965248  ;;  %s2553_s10 = scalar_lea.vmem [#allocation7], %s1554_s18  ;;  %s308_s30 = scalar_lea.sflag [#allocation9], %s289_s2 }
  0x98   : > { %s2555_s15 = scalar_lea.vmem [#allocation8], %s1554_s18 }
  0x99   : > { %2259 = dma.done.wait (%p2764_p2), %s308_s30, 1152  }
  0x9a   : > { %2261 = vsyncadd (%p2764_p2), %s308_s30, 4294966144  ;;  %s1557_s29 = sshll.u32 %s291_s13, 3  ;;  %p2765_p5 = scmp.ne.s32.totalorder %s2450_s6, 0 }
  0x9b   : > { %s2561_s16 = scalar_lea.vmem [#allocation10], %s1557_s29 }
  0x9c   : > { %361 = sbr.rel (%p2765_p5) target bundleno = 170 (0xaa), region = 64 }
  0xa1   : > { %v2289_v0 = vmov 0  }
  0xa2   : > { %362 = vst [vmem:[#allocation11] sm:$0xf] %v2289_v0  ;;  %363 = vst [vmem:[#allocation11 + $0x4] sm:$0xf] %v2289_v0 }
  0xa3   : > { %364 = vst [vmem:[#allocation11 + $0x8] sm:$0xf] %v2289_v0  ;;  %365 = vst [vmem:[#allocation11 + $0xc] sm:$0xf] %v2289_v0 }
  0xa4   : > { %366 = vst [vmem:[#allocation11 + $0x10] sm:$0xf] %v2289_v0  ;;  %367 = vst [vmem:[#allocation11 + $0x14] sm:$0xf] %v2289_v0 }
  0xa5   : > { %368 = vst [vmem:[#allocation11 + $0x18] sm:$0xf] %v2289_v0  ;;  %369 = vst [vmem:[#allocation11 + $0x1c] sm:$0xf] %v2289_v0 }
  0xa6   : > { %370 = vst [vmem:[#allocation11 + $0x20] sm:$0xf] %v2289_v0  ;;  %371 = vst [vmem:[#allocation11 + $0x24] sm:$0xf] %v2289_v0 }
  0xa7   : > { %372 = vst [vmem:[#allocation11 + $0x28] sm:$0xf] %v2289_v0  ;;  %373 = vst [vmem:[#allocation11 + $0x2c] sm:$0xf] %v2289_v0 }
  0xa8   : > { %374 = vst [vmem:[#allocation11 + $0x30] sm:$0xf] %v2289_v0  ;;  %375 = vst [vmem:[#allocation11 + $0x34] sm:$0xf] %v2289_v0 }
  0xa9   : > { %376 = vst [vmem:[#allocation11 + $0x38] sm:$0xf] %v2289_v0  ;;  %377 = vst [vmem:[#allocation11 + $0x3c] sm:$0xf] %v2289_v0 }
  0xaa PF: > { %v2046_v5 = vld [vmem:[#allocation2] sm:$0xff]   ;;  %v2054_v8 = vld [vmem:[%s2553_s10 + $0x38] sm:$0xff]   ;;  %v2055_v9 = vld [vmem:[%s2553_s10 + $0x30] sm:$0xff]   ;;  %p1595_p1 = scmp.eq.s32.totalorder %s2450_s6, 1 }
  0xab   : > { %1865 = vmatprep.mubr.bf16.mxu0 %v2046_v5  ;;  %v2043_v7 = vld [vmem:[#allocation11 + $0x10] sm:$0xff]   ;;  %1881 = vmatprep.subr.bf16.mxu1 %v2054_v8  ;;  %v2044_v10 = vld [vmem:[#allocation11 + $0x8] sm:$0xff]   ;;  %v2056_v11 = vld [vmem:[%s2553_s10 + $0x28] sm:$0xff]  }
  0xac   : > { %v2042_v6 = vld [vmem:[#allocation11 + $0x18] sm:$0xff]   ;;  %1882 = vmatpush3.bf16.msra.mxu1 %v2054_v8  ;;  %v2045_v12 = vld [vmem:[#allocation11] sm:$0xff]   ;;  %v2057_v13 = vld [vmem:[%s2553_s10 + $0x20] sm:$0xff]  }
  0xad   : > { %v2041_v4 = vld [vmem:[#allocation11 + $0x20] sm:$0xff]   ;;  %1883 = vmatprep.subr.bf16.mxu1 %v2055_v9  ;;  %v2058_v14 = vld [vmem:[%s2553_s10 + $0x18] sm:$0xff]   ;;  %v2047_v15 = vld [vmem:[#allocation2 + $0x8] sm:$0xff]  }
  0xae   : > { %v2040_v3 = vld [vmem:[#allocation11 + $0x28] sm:$0xff]   ;;  %v2048_v16 = vld [vmem:[#allocation2 + $0x10] sm:$0xff]   ;;  %v2050_v18 = vld [vmem:[#allocation2 + $0x20] sm:$0xff]  }
  0xaf   : > { %v2039_v2 = vld [vmem:[#allocation11 + $0x30] sm:$0xff]   ;;  %v2049_v17 = vld [vmem:[#allocation2 + $0x18] sm:$0xff]   ;;  %v2051_v19 = vld [vmem:[#allocation2 + $0x28] sm:$0xff]  }
  0xb0   : > { %v2038_v1 = vld [vmem:[#allocation11 + $0x38] sm:$0xff]   ;;  %1884 = vmatpush3.bf16.msra.mxu1 %v2055_v9  ;;  %v2052_v20 = vld [vmem:[#allocation2 + $0x30] sm:$0xff]   ;;  %v2053_v21 = vld [vmem:[#allocation2 + $0x38] sm:$0xff]  }
  0xb1   : > { %1849 = vmatprep.subr.bf16.mxu0 %v2038_v1  ;;  %1885 = vmatprep.subr.bf16.mxu1 %v2056_v11  ;;  %v2059_v22 = vld [vmem:[%s2553_s10 + $0x10] sm:$0xff]   ;;  %v2060_v23 = vld [vmem:[%s2553_s10 + $0x8] sm:$0xff]   ;;  %v2061_v24 = vld [vmem:[%s2553_s10] sm:$0xff]  }
  0xb2   : > { %1850 = vmatpush3.bf16.msra.mxu0 %v2038_v1  ;;  %v2062_v25 = vld [vmem:[%s2555_s15 + $0x38] sm:$0xff]   ;;  %v2063_v26 = vld [vmem:[%s2555_s15 + $0x30] sm:$0xff]   ;;  %v2064_v27 = vld [vmem:[%s2555_s15 + $0x28] sm:$0xff]  }
  0xb3   : > { %1851 = vmatprep.subr.bf16.mxu0 %v2039_v2  ;;  %v2577_v28 = vld [vmem:[%s2555_s15 + $0x20] sm:$0xff]   ;;  %v2581_v29 = vld [vmem:[%s2555_s15 + $0x18] sm:$0xff]   ;;  %v1780_v32 = vld [vmem:[%s2547_s7 + $0x8] sm:$0xff]  }
  0xb4   : > { %1886 = vmatpush3.bf16.msra.mxu1 %v2056_v11  ;;  %v1669_v31 = vld [vmem:[%s2547_s7] sm:$0xff]   ;;  %v1675_v34 = vunpack.c.h.bf16 %v1780_v32  ;;  %v1674_v37 = vunpack.c.l.bf16 %v1780_v32  ;;  %v1781_v45 = vld [vmem:[%s2547_s7 + $0x10] sm:$0xff]   ;;  %v1782_v46 = vld [vmem:[%s2547_s7 + $0x18] sm:$0xff]  }
  0xb5   : > { %1887 = vmatprep.subr.bf16.mxu1 %v2057_v13  ;;  %v1670_v35 = vunpack.c.l.bf16 %v1669_v31  ;;  %v1671_v36 = vunpack.c.h.bf16 %v1669_v31  ;;  %v1683_v50 = vunpack.c.h.bf16 %v1782_v46  ;;  %v1678_v51 = vunpack.c.l.bf16 %v1781_v45  ;;  %v1783_v61 = vld [vmem:[%s2547_s7 + $0x20] sm:$0xff]   ;;  %v1784_v63 = vld [vmem:[%s2547_s7 + $0x28] sm:$0xff]   ;;  %v2067_v31 = vld [vmem:[%s2555_s15 + $0x10] sm:$0xff]  }
  0xb6   : > { %1852 = vmatpush3.bf16.msra.mxu0 %v2039_v2  ;;  %v1679_v52 = vunpack.c.h.bf16 %v1781_v45  ;;  %v1682_v53 = vunpack.c.l.bf16 %v1782_v46  ;;  %v1691_v2 = vunpack.c.h.bf16 %v1784_v63  ;;  %v1690_v5 = vunpack.c.l.bf16 %v1784_v63  ;;  %v2068_v32 = vld [vmem:[%s2555_s15 + $0x8] sm:$0xff]  }
  0xb7   : > { %1853 = vmatprep.subr.bf16.mxu0 %v2040_v3 }
  0xb8   : > { %1888 = vmatpush3.bf16.msra.mxu1 %v2057_v13  ;;  %v1785_v13 = vld [vmem:[%s2547_s7 + $0x30] sm:$0xff]  }
  0xb9   : > { %1889 = vmatprep.subr.bf16.mxu1 %v2058_v14 }
  0xba   : > { %1854 = vmatpush3.bf16.msra.mxu0 %v2040_v3  ;;  %v1686_v3 = vunpack.c.l.bf16 %v1783_v61 }
  0xbb   : > { %1855 = vmatprep.subr.bf16.mxu0 %v2041_v4 }
  0xbc   : > { %1890 = vmatpush3.bf16.msra.mxu1 %v2058_v14 }
  0xbd   : > { %1891 = vmatprep.subr.bf16.mxu1 %v2059_v22 }
  0xbe   : > { %1856 = vmatpush3.bf16.msra.mxu0 %v2041_v4  ;;  %v1687_v4 = vunpack.c.h.bf16 %v1783_v61 }
  0xbf   : > { %1857 = vmatprep.subr.bf16.mxu0 %v2042_v6 }
  0xc0   : > { %1892 = vmatpush3.bf16.msra.mxu1 %v2059_v22 }
  0xc1   : > { %1893 = vmatprep.subr.bf16.mxu1 %v2060_v23 }
  0xc2   : > { %1858 = vmatpush3.bf16.msra.mxu0 %v2042_v6 }
  0xc3   : > { %1859 = vmatprep.subr.bf16.mxu0 %v2043_v7 }
  0xc4   : > { %1894 = vmatpush3.bf16.msra.mxu1 %v2060_v23 }
  0xc5   : > { %1895 = vmatprep.subr.bf16.mxu1 %v2061_v24 }
  0xc6   : > { %1860 = vmatpush3.bf16.msra.mxu0 %v2043_v7 }
  0xc7   : > { %1861 = vmatprep.subr.bf16.mxu0 %v2044_v10 }
  0xc8   : > { %1896 = vmatpush3.bf16.msra.mxu1 %v2061_v24 }
  0xc9   : > { %1945 = vmatprep.subr.bf16.mxu1 %v2062_v25 }
  0xca   : > { %1862 = vmatpush3.bf16.msra.mxu0 %v2044_v10 }
  0xcb   : > { %1863 = vmatprep.subr.bf16.mxu0 %v2045_v12 }
  0xce   : > { %1864 = vmatpush3.bf16.msra.mxu0 %v2045_v12 }
  0xcf   : > { %1913 = vmatprep.subr.bf16.mxu0 %v2062_v25 }
  0xd1   : > { %1866 = vmatmul.mubr.bf16.vlgmr.msra.gmra.mxu0 %v2047_v15  ;;  %v1786_v15 = vld [vmem:[%s2547_s7 + $0x38] sm:$0xff]  }
  0xd2   : > { %1869 = vmatprep.mubr.bf16.mxu0 %v2048_v16  ;;  %1914 = vmatpush3.bf16.msra.mxu0 %v2062_v25 }
  0xd3   : > { %1915 = vmatprep.subr.bf16.mxu0 %v2063_v26 }
  0xd6   : > { %1916 = vmatpush3.bf16.msra.mxu0 %v2063_v26 }
  0xd7   : > { %1917 = vmatprep.subr.bf16.mxu0 %v2064_v27 }
  0xd9   : > { %1870 = vmatmul.mubr.bf16.gmra.mxu0 %v2049_v17 }
  0xda   : > { %1873 = vmatprep.mubr.bf16.mxu0 %v2050_v18  ;;  %1918 = vmatpush3.bf16.msra.mxu0 %v2064_v27  ;;  %v1699_v18 = vunpack.c.h.bf16 %v1786_v15 }
  0xdb   : > { %1919 = vmatprep.subr.bf16.mxu0 %v2577_v28 }
  0xde   : > { %1920 = vmatpush3.bf16.msra.mxu0 %v2577_v28 }
  0xdf   : > { %1921 = vmatprep.subr.bf16.mxu0 %v2581_v29 }
  0xe1   : > { %1874 = vmatmul.mubr.bf16.gmra.mxu0 %v2051_v19  ;;  %v1694_v19 = vunpack.c.l.bf16 %v1785_v13 }
  0xe2   : > { %1877 = vmatprep.mubr.bf16.mxu0 %v2052_v20  ;;  %1922 = vmatpush3.bf16.msra.mxu0 %v2581_v29  ;;  %v1695_v20 = vunpack.c.h.bf16 %v1785_v13 }
  0xe3   : > { %1923 = vmatprep.subr.bf16.mxu0 %v2067_v31 }
  0xe6   : > { %1924 = vmatpush3.bf16.msra.mxu0 %v2067_v31 }
  0xe7   : > { %1925 = vmatprep.subr.bf16.mxu0 %v2068_v32 }
  0xe9   : > { %1878 = vmatmul.mubr.bf16.gmra.mxu0 %v2053_v21  ;;  %v1698_v21 = vunpack.c.l.bf16 %v1786_v15 }
  0xea   : > { %1926 = vmatpush3.bf16.msra.mxu0 %v2068_v32 }
 0x191   : > { %v1867_v30 = vpop.f32.mrf.mxu0 }
 0x192   : > { %v581_v43 = vadd.f32 %v1867_v30, %v1674_v37 }
 0x193   : > { %v572_v33 = vpop.f32.mrf.mxu0 }
 0x194   : > { %v573_v41 = vadd.f32 %v1670_v35, %v572_v33  ;;  %v1575_v35 = vld [vmem:[%s2561_s16] ss:$0 sm:$0xff] }
 0x195   : > { %v1868_v38 = vpop.f32.mrf.mxu0 }
 0x196   : > { %v584_v39 = vadd.f32 %v1868_v38, %v1675_v34 }
 0x197   : > { %v575_v40 = vpop.f32.mrf.mxu0 }
 0x198   : > { %v576_v42 = vadd.f32 %v1671_v36, %v575_v40  ;;  %v640_v48 = vpack.c.bf16 %v584_v39, %v581_v43 }
 0x199   : > { %v1871_v44 = vpop.f32.mrf.mxu0 }
 0x19a   : > { %v639_v47 = vpack.c.bf16 %v576_v42, %v573_v41  ;;  %v597_v59 = vadd.f32 %v1871_v44, %v1682_v53 }
 0x19b   : > { %v588_v49 = vpop.f32.mrf.mxu0 }
 0x19c   : > { %1897 = vmatprep.mubr.bf16.mxu1 %v639_v47  ;;  %v589_v57 = vadd.f32 %v1678_v51, %v588_v49 }
 0x19d   : > { %v1872_v54 = vpop.f32.mrf.mxu0  ;;  %1898 = vmatmul.mubr.bf16.vlgmr.msra.gmra.mxu1 %v640_v48 }
 0x19e   : > { %1953 = vmatpush3.bf16.msra.mxu1 %v2062_v25  ;;  %v600_v55 = vadd.f32 %v1872_v54, %v1683_v50 }
 0x19f   : > { %v591_v56 = vpop.f32.mrf.mxu0  ;;  %1946 = vmatprep.subr.bf16.mxu1 %v2063_v26 }
 0x1a0   : > { %v592_v58 = vadd.f32 %v1679_v52, %v591_v56  ;;  %v642_v0 = vpack.c.bf16 %v600_v55, %v597_v59 }
 0x1a1   : > { %v1875_v60 = vpop.f32.mrf.mxu0 }
 0x1a2   : > { %v641_v62 = vpack.c.bf16 %v592_v58, %v589_v57  ;;  %1954 = vmatpush3.bf16.msra.mxu1 %v2063_v26  ;;  %v613_v11 = vadd.f32 %v1875_v60, %v1690_v5 }
 0x1a3   : > { %v604_v1 = vpop.f32.mrf.mxu0  ;;  %1947 = vmatprep.subr.bf16.mxu1 %v2064_v27 }
 0x1a4   : > { %1901 = vmatprep.mubr.bf16.mxu1 %v641_v62  ;;  %v605_v9 = vadd.f32 %v1686_v3, %v604_v1 }
 0x1a5   : > { %v1876_v6 = vpop.f32.mrf.mxu0  ;;  %1902 = vmatmul.mubr.bf16.gmra.mxu1 %v642_v0 }
 0x1a6   : > { %1955 = vmatpush3.bf16.msra.mxu1 %v2064_v27  ;;  %v616_v7 = vadd.f32 %v1876_v6, %v1691_v2 }
 0x1a7   : > { %v607_v8 = vpop.f32.mrf.mxu0  ;;  %1948 = vmatprep.subr.bf16.mxu1 %v2577_v28 }
 0x1a8   : > { %v608_v10 = vadd.f32 %v1687_v4, %v607_v8  ;;  %v644_v16 = vpack.c.bf16 %v616_v7, %v613_v11 }
 0x1a9   : > { %v1879_v12 = vpop.f32.mrf.mxu0 }
 0x1aa   : > { %v643_v14 = vpack.c.bf16 %v608_v10, %v605_v9  ;;  %1956 = vmatpush3.bf16.msra.mxu1 %v2577_v28  ;;  %v629_v27 = vadd.f32 %v1879_v12, %v1698_v21 }
 0x1ab   : > { %v620_v17 = vpop.f32.mrf.mxu0  ;;  %1949 = vmatprep.subr.bf16.mxu1 %v2581_v29 }
 0x1ac   : > { %1905 = vmatprep.mubr.bf16.mxu1 %v643_v14  ;;  %v621_v25 = vadd.f32 %v1694_v19, %v620_v17 }
 0x1ad   : > { %v1880_v22 = vpop.f32.mrf.mxu0  ;;  %1906 = vmatmul.mubr.bf16.gmra.mxu1 %v644_v16 }
 0x1ae   : > { %1957 = vmatpush3.bf16.msra.mxu1 %v2581_v29  ;;  %v632_v23 = vadd.f32 %v1880_v22, %v1699_v18  ;;  %v2069_v29 = vld [vmem:[%s2555_s15] sm:$0xff]  }
 0x1af   : > { %v623_v24 = vpop.f32.mrf.mxu0  ;;  %1950 = vmatprep.subr.bf16.mxu1 %v2067_v31  ;;  %1927 = vmatprep.subr.bf16.mxu0 %v2069_v29 }
 0x1b0   : > { %v624_v26 = vadd.f32 %v1695_v20, %v623_v24  ;;  %v646_v30 = vpack.c.bf16 %v632_v23, %v629_v27  ;;  %1928 = vmatpush3.bf16.msra.mxu0 %v2069_v29  ;;  %v2603_v27 = vld [vmem:[%s2561_s16 + $0x1] ss:$0 sm:$0xff] }
 0x1b2   : > { %v645_v28 = vpack.c.bf16 %v624_v26, %v621_v25  ;;  %1958 = vmatpush3.bf16.msra.mxu1 %v2067_v31 }
 0x1b3   : > { %1951 = vmatprep.subr.bf16.mxu1 %v2068_v32 }
 0x1b4   : > { %1909 = vmatprep.mubr.bf16.mxu1 %v645_v28 }
 0x1b5   : > { %1910 = vmatmul.mubr.bf16.gmra.mxu1 %v646_v30 }
 0x1b6   : > { %1959 = vmatpush3.bf16.msra.mxu1 %v2068_v32 }
 0x1b7   : > { %1952 = vmatprep.subr.bf16.mxu1 %v2069_v29 }
 0x1ba   : > { %1960 = vmatpush3.bf16.msra.mxu1 %v2069_v29 }
 0x25d   : > { %v1899_v33 = vpop.f32.mrf.mxu1 }
 0x25e   : > { %v758_v39 = vadd.f32 %v1899_v33, %v1575_v35 }
 0x25f   : > { %v749_v34 = vpop.f32.mrf.mxu1 }
 0x260   : > { %v750_v37 = vadd.f32 %v1575_v35, %v749_v34  ;;  %v814_v46 = vmax.f32 %v758_v39, 0.0 }
 0x261   : > { %v1900_v36 = vpop.f32.mrf.mxu1 }
 0x262   : > { %v761_v38 = vadd.f32 %v1900_v36, %v1575_v35  ;;  %v812_v44 = vmax.f32 %v750_v37, 0.0 }
 0x263   : > { %v752_v40 = vpop.f32.mrf.mxu1 }
 0x264   : > { %v753_v41 = vadd.f32 %v1575_v35, %v752_v40  ;;  %v815_v42 = vmax.f32 %v761_v38, 0.0 }
 0x265   : > { %v1903_v43 = vpop.f32.mrf.mxu1 }
 0x266   : > { %v813_v45 = vmax.f32 %v753_v41, 0.0  ;;  %v829_v49 = vpack.c.bf16 %v815_v42, %v814_v46  ;;  %v774_v53 = vadd.f32 %v1903_v43, %v1575_v35 }
 0x267   : > { %v765_v47 = vpop.f32.mrf.mxu1 }
 0x268   : > { %v828_v48 = vpack.c.bf16 %v813_v45, %v812_v44  ;;  %v766_v51 = vadd.f32 %v1575_v35, %v765_v47  ;;  %v818_v60 = vmax.f32 %v774_v53, 0.0 }
 0x269   : > { %v1904_v50 = vpop.f32.mrf.mxu1 }
 0x26a   : > { %v777_v52 = vadd.f32 %v1904_v50, %v1575_v35  ;;  %1929 = vmatprep.mubr.bf16.mxu0 %v828_v48  ;;  %v816_v58 = vmax.f32 %v766_v51, 0.0 }
 0x26b   : > { %v768_v54 = vpop.f32.mrf.mxu1  ;;  %1930 = vmatmul.mubr.bf16.vlgmr.msra.gmra.mxu0 %v829_v49 }
 0x26c   : > { %v769_v55 = vadd.f32 %v1575_v35, %v768_v54  ;;  %v819_v56 = vmax.f32 %v777_v52, 0.0 }
 0x26d   : > { %v1907_v57 = vpop.f32.mrf.mxu1 }
 0x26e   : > { %v817_v59 = vmax.f32 %v769_v55, 0.0  ;;  %v831_v63 = vpack.c.bf16 %v819_v56, %v818_v60  ;;  %v790_v3 = vadd.f32 %v1907_v57, %v1575_v35 }
 0x26f   : > { %v781_v61 = vpop.f32.mrf.mxu1 }
 0x270   : > { %v830_v62 = vpack.c.bf16 %v817_v59, %v816_v58  ;;  %v782_v1 = vadd.f32 %v1575_v35, %v781_v61  ;;  %v822_v10 = vmax.f32 %v790_v3, 0.0 }
 0x271   : > { %v1908_v0 = vpop.f32.mrf.mxu1 }
 0x272   : > { %v793_v2 = vadd.f32 %v1908_v0, %v1575_v35  ;;  %1933 = vmatprep.mubr.bf16.mxu0 %v830_v62  ;;  %v820_v8 = vmax.f32 %v782_v1, 0.0 }
 0x273   : > { %v784_v4 = vpop.f32.mrf.mxu1  ;;  %1934 = vmatmul.mubr.bf16.gmra.mxu0 %v831_v63 }
 0x274   : > { %v785_v5 = vadd.f32 %v1575_v35, %v784_v4  ;;  %v823_v6 = vmax.f32 %v793_v2, 0.0 }
 0x275   : > { %v1911_v7 = vpop.f32.mrf.mxu1 }
 0x276   : > { %v821_v9 = vmax.f32 %v785_v5, 0.0  ;;  %v833_v13 = vpack.c.bf16 %v823_v6, %v822_v10  ;;  %v806_v17 = vadd.f32 %v1911_v7, %v1575_v35 }
 0x277   : > { %v797_v11 = vpop.f32.mrf.mxu1 }
 0x278   : > { %v832_v12 = vpack.c.bf16 %v821_v9, %v820_v8  ;;  %v798_v15 = vadd.f32 %v1575_v35, %v797_v11  ;;  %v826_v23 = vmax.f32 %v806_v17, 0.0 }
 0x279   : > { %v1912_v14 = vpop.f32.mrf.mxu1 }
 0x27a   : > { %v809_v16 = vadd.f32 %v1912_v14, %v1575_v35  ;;  %1937 = vmatprep.mubr.bf16.mxu1 %v832_v12  ;;  %v824_v21 = vmax.f32 %v798_v15, 0.0 }
 0x27b   : > { %v800_v18 = vpop.f32.mrf.mxu1  ;;  %1938 = vmatmul.mubr.bf16.vlgmr.msra.gmra.mxu1 %v833_v13 }
 0x27c   : > { %v801_v19 = vadd.f32 %v1575_v35, %v800_v18  ;;  %v827_v20 = vmax.f32 %v809_v16, 0.0 }
 0x27e   : > { %v825_v22 = vmax.f32 %v801_v19, 0.0  ;;  %v835_v25 = vpack.c.bf16 %v827_v20, %v826_v23 }
 0x280   : > { %v834_v24 = vpack.c.bf16 %v825_v22, %v824_v21 }
 0x282   : > { %1941 = vmatprep.mubr.bf16.mxu1 %v834_v24 }
 0x283   : > { %1942 = vmatmul.mubr.bf16.gmra.mxu1 %v835_v25 }
 0x32b   : > { %v1931_v26 = vpop.f32.mrf.mxu0 }
 0x32c   : > { %v2606_v30 = vadd.f32 %v1931_v26, %v2603_v27 }
 0x32d   : > { %v938_v28 = vpop.f32.mrf.mxu0 }
 0x32e   : > { %v2609_v32 = vadd.f32 %v2603_v27, %v938_v28  ;;  %v1068_v34 = vmul.f32 0.0, %v2606_v30 }
 0x32f   : > { %v1932_v31 = vpop.f32.mrf.mxu0 }
 0x330   : > { %v2612_v29 = vadd.f32 %v1932_v31, %v2603_v27  ;;  %v1104_v38 = vmul.f32 %v2609_v32, %v2609_v32  ;;  %v1106_v42 = vmul.f32 %v1068_v34, %v2606_v30 }
 0x331   : > { %v941_v33 = vpop.f32.mrf.mxu0 }
 0x332   : > { %v2616_v35 = vadd.f32 %v2603_v27, %v941_v33  ;;  %v1069_v36 = vmul.f32 0.0, %v2612_v29 }
 0x333   : > { %v1935_v37 = vpop.f32.mrf.mxu0 }
 0x334   : > { %v1082_v39 = vadd.f32 %v2616_v35, %v2609_v32  ;;  %v1105_v40 = vmul.f32 %v2616_v35, %v2616_v35  ;;  %v1107_v46 = vmul.f32 %v1069_v36, %v2612_v29  ;;  %v2631_v49 = vadd.f32 %v1935_v37, %v2603_v27 }
 0x335   : > { %v954_v41 = vpop.f32.mrf.mxu0 }
 0x336   : > { %v1083_v43 = vadd.f32 %v1082_v39, %v1068_v34  ;;  %v1120_v44 = vadd.f32 %v1105_v40, %v1104_v38  ;;  %v2627_v45 = vadd.f32 %v2603_v27, %v954_v41  ;;  %v1072_v58 = vmul.f32 0.0, %v2631_v49 }
 0x337   : > { %v1936_v47 = vpop.f32.mrf.mxu0 }
 0x338   : > { %v1121_v48 = vadd.f32 %v1120_v44, %v1106_v42  ;;  %v1070_v50 = vmul.f32 0.0, %v2627_v45  ;;  %v1084_v51 = vadd.f32 %v1083_v43, %v1069_v36  ;;  %v2635_v52 = vadd.f32 %v1936_v47, %v2603_v27 }
 0x339   : > { %v957_v53 = vpop.f32.mrf.mxu0  ;;  %v1110_v5 = vmul.f32 %v1072_v58, %v2631_v49 }
 0x33a   : > { %v1108_v54 = vmul.f32 %v1070_v50, %v2627_v45  ;;  %v1122_v55 = vadd.f32 %v1121_v48, %v1107_v46  ;;  %v2639_v56 = vadd.f32 %v2603_v27, %v957_v53  ;;  %v1085_v59 = vadd.f32 %v1084_v51, %v1070_v50 }
 0x33b   : > { %v1939_v57 = vpop.f32.mrf.mxu1  ;;  %v1073_v61 = vmul.f32 0.0, %v2635_v52 }
 0x33c   : > { %v1071_v60 = vmul.f32 0.0, %v2639_v56  ;;  %v1123_v63 = vadd.f32 %v1122_v55, %v1108_v54  ;;  %v2649_v3 = vadd.f32 %v1939_v57, %v2603_v27 }
 0x33d   : > { %v970_v62 = vpop.f32.mrf.mxu1  ;;  %v1111_v11 = vmul.f32 %v1073_v61, %v2635_v52 }
 0x33e   : > { %v1086_v0 = vadd.f32 %v1085_v59, %v1071_v60  ;;  %v1109_v1 = vmul.f32 %v1071_v60, %v2639_v56  ;;  %v2646_v2 = vadd.f32 %v2603_v27, %v970_v62  ;;  %v1076_v15 = vmul.f32 0.0, %v2649_v3 }
 0x33f   : > { %v1940_v4 = vpop.f32.mrf.mxu1 }
 0x340   : > { %v1087_v6 = vadd.f32 %v1086_v0, %v1072_v58  ;;  %v1124_v7 = vadd.f32 %v1123_v63, %v1109_v1  ;;  %v1074_v8 = vmul.f32 0.0, %v2646_v2  ;;  %v2654_v9 = vadd.f32 %v1940_v4, %v2603_v27 }
 0x341   : > { %v973_v10 = vpop.f32.mrf.mxu1  ;;  %v1114_v33 = vmul.f32 %v1076_v15, %v2649_v3 }
 0x342   : > { %v1125_v12 = vadd.f32 %v1124_v7, %v1110_v5  ;;  %v1088_v13 = vadd.f32 %v1087_v6, %v1073_v61  ;;  %v2658_v14 = vadd.f32 %v2603_v27, %v973_v10  ;;  %v1112_v18 = vmul.f32 %v1074_v8, %v2646_v2 }
 0x343   : > { %v1943_v16 = vpop.f32.mrf.mxu1  ;;  %v1077_v21 = vmul.f32 0.0, %v2654_v9 }
 0x344   : > { %v1089_v17 = vadd.f32 %v1088_v13, %v1074_v8  ;;  %v1126_v19 = vadd.f32 %v1125_v12, %v1111_v11  ;;  %v1075_v20 = vmul.f32 0.0, %v2658_v14  ;;  %v2666_v26 = vadd.f32 %v1943_v16, %v2603_v27 }
 0x345   : > { %v986_v22 = vpop.f32.mrf.mxu1  ;;  %v1115_v37 = vmul.f32 %v1077_v21, %v2654_v9 }
 0x346   : > { %v1127_v23 = vadd.f32 %v1126_v19, %v1112_v18  ;;  %v1090_v24 = vadd.f32 %v1089_v17, %v1075_v20  ;;  %v1113_v25 = vmul.f32 %v1075_v20, %v2658_v14  ;;  %v2669_v28 = vadd.f32 %v2603_v27, %v986_v22 }
 0x347   : > { %v1944_v31 = vpop.f32.mrf.mxu1  ;;  %v1080_v44 = vmul.f32 0.0, %v2666_v26 }
 0x348   : > { %v1091_v34 = vadd.f32 %v1090_v24, %v1076_v15  ;;  %v1128_v36 = vadd.f32 %v1127_v23, %v1113_v25  ;;  %v1078_v38 = vmul.f32 0.0, %v2669_v28  ;;  %v2675_v42 = vadd.f32 %v1944_v31, %v2603_v27 }
 0x349   : > { %v989_v39 = vpop.f32.mrf.mxu1  ;;  %v1118_v57 = vmul.f32 %v1080_v44, %v2666_v26 }
 0x34a   : > { %v1129_v40 = vadd.f32 %v1128_v36, %v1114_v33  ;;  %v1092_v41 = vadd.f32 %v1091_v34, %v1077_v21  ;;  %v2678_v43 = vadd.f32 %v2603_v27, %v989_v39  ;;  %v1116_v47 = vmul.f32 %v1078_v38, %v2669_v28 }
 0x34b   : > { %v1081_v53 = vmul.f32 0.0, %v2675_v42 }
 0x34c   : > { %v1093_v46 = vadd.f32 %v1092_v41, %v1078_v38  ;;  %v1130_v48 = vadd.f32 %v1129_v40, %v1115_v37  ;;  %v1079_v50 = vmul.f32 0.0, %v2678_v43 }
 0x34d   : > { %v1119_v27 = vmul.f32 %v1081_v53, %v2675_v42 }
 0x34e   : > { %v1131_v51 = vadd.f32 %v1130_v48, %v1116_v47  ;;  %v1094_v54 = vadd.f32 %v1093_v46, %v1079_v50  ;;  %v1117_v55 = vmul.f32 %v1079_v50, %v2678_v43 }
 0x350   : > { %v1095_v58 = vadd.f32 %v1094_v54, %v1080_v44  ;;  %v1132_v59 = vadd.f32 %v1131_v51, %v1117_v55  ;;  %v1594_v55 = vld [vmem:[%s2561_s16 + $0x3] ss:$0 sm:$0xff] }
 0x352   : > { %v1096_v60 = vadd.f32 %v1095_v58, %v1081_v53  ;;  %v1133_v61 = vadd.f32 %v1132_v59, %v1118_v57 }
 0x354   : > { %v1097_v62 = vrot.slane %v1096_v60, 4  ;;  %v1134_v63 = vadd.f32 %v1133_v61, %v1119_v27 }
 0x356   : > { %v1098_v0 = vadd.f32 %v1097_v62, %v1096_v60  ;;  %v1135_v1 = vrot.slane %v1134_v63, 4 }
 0x358   : > { %v1099_v4 = vrot.slane %v1098_v0, 2  ;;  %v1136_v5 = vadd.f32 %v1135_v1, %v1134_v63 }
 0x35a   : > { %v1100_v6 = vadd.f32 %v1099_v4, %v1098_v0  ;;  %v1137_v7 = vrot.slane %v1136_v5, 2 }
 0x35c   : > { %v1101_v8 = vrot.slane %v1100_v6, 1  ;;  %v1138_v10 = vadd.f32 %v1137_v7, %v1136_v5 }
 0x35e   : > { %v1102_v11 = vadd.f32 %v1101_v8, %v1100_v6  ;;  %v1139_v12 = vrot.slane %v1138_v10, 1 }
 0x360   : > { %v1103_v13 = vmul.f32 0.0625, %v1102_v11  ;;  %v1140_v15 = vadd.f32 %v1139_v12, %v1138_v10 }
 0x362   : > { %v1141_v16 = vmul.f32 0.0625, %v1140_v15  ;;  %v1142_v17 = vmul.f32 %v1103_v13, %v1103_v13  ;;  %v1145_v21 = vsub.f32 %v2609_v32, %v1103_v13  ;;  %v1146_v22 = vsub.f32 %v2616_v35, %v1103_v13 }
 0x363   : > { %v1147_v23 = vsub.f32 %v2606_v30, %v1103_v13  ;;  %v1148_v24 = vsub.f32 %v2612_v29, %v1103_v13  ;;  %v1149_v25 = vsub.f32 %v2627_v45, %v1103_v13  ;;  %v1150_v31 = vsub.f32 %v2639_v56, %v1103_v13 }
 0x364   : > { %v1143_v18 = vsub.f32 %v1141_v16, %v1142_v17  ;;  %v1151_v33 = vsub.f32 %v2631_v49, %v1103_v13  ;;  %v1152_v34 = vsub.f32 %v2635_v52, %v1103_v13  ;;  %v1153_v36 = vsub.f32 %v2646_v2, %v1103_v13  ;;  %v1593_v2 = vld [vmem:[%s2561_s16 + $0x2] ss:$0 sm:$0xff] }
 0x365   : > { %v1154_v37 = vsub.f32 %v2658_v14, %v1103_v13  ;;  %v1155_v32 = vsub.f32 %v2649_v3, %v1103_v13  ;;  %v1156_v35 = vsub.f32 %v2654_v9, %v1103_v13  ;;  %v1157_v29 = vsub.f32 %v2669_v28, %v1103_v13 }
 0x366   : > { %v1144_v19 = vmax.f32 %v1143_v18, 0.0  ;;  %v1158_v45 = vsub.f32 %v2678_v43, %v1103_v13  ;;  %v1159_v56 = vsub.f32 %v2666_v26, %v1103_v13  ;;  %v1160_v38 = vsub.f32 %v2675_v42, %v1103_v13 }
 0x368   : > { %v1161_v20 = vadd.f32 1e-05, %v1144_v19 }
 0x36a   : > { %2070 = vrsqrt.f32 %v1161_v20 }
 0x377   : > { %v2071_v30 = vpop.eup %2070 }
 0x378   : > { %v1163_v49 = vmul.f32 %v2071_v30, %v1145_v21  ;;  %v1164_v39 = vmul.f32 %v2071_v30, %v1146_v22  ;;  %v1165_v52 = vmul.f32 %v2071_v30, %v1147_v23  ;;  %v1166_v40 = vmul.f32 %v2071_v30, %v1148_v24 }
 0x379   : > { %v1167_v41 = vmul.f32 %v2071_v30, %v1149_v25  ;;  %v1168_v14 = vmul.f32 %v2071_v30, %v1150_v31  ;;  %v1169_v3 = vmul.f32 %v2071_v30, %v1151_v33  ;;  %v1170_v44 = vmul.f32 %v2071_v30, %v1152_v34 }
 0x37a   : > { %v1171_v9 = vmul.f32 %v2071_v30, %v1153_v36  ;;  %v1172_v46 = vmul.f32 %v2071_v30, %v1154_v37  ;;  %v1173_v47 = vmul.f32 %v2071_v30, %v1155_v32  ;;  %v1174_v28 = vmul.f32 %v2071_v30, %v1156_v35 }
 0x37b   : > { %v1175_v48 = vmul.f32 %v2071_v30, %v1157_v29  ;;  %v1176_v43 = vmul.f32 %v2071_v30, %v1158_v45  ;;  %v1177_v50 = vmul.f32 %v2071_v30, %v1159_v56  ;;  %v1178_v26 = vmul.f32 %v2071_v30, %v1160_v38 }
 0x37c   : > { %v1183_v51 = vmul.f32 %v1593_v2, %v1163_v49  ;;  %v1184_v42 = vmul.f32 %v1593_v2, %v1164_v39  ;;  %v1185_v53 = vmul.f32 %v1593_v2, %v1165_v52  ;;  %v1186_v54 = vmul.f32 %v1593_v2, %v1166_v40 }
 0x37d   : > { %v1187_v57 = vmul.f32 %v1593_v2, %v1167_v41  ;;  %v1188_v58 = vmul.f32 %v1593_v2, %v1168_v14  ;;  %v1189_v59 = vmul.f32 %v1593_v2, %v1169_v3  ;;  %v1190_v27 = vmul.f32 %v1593_v2, %v1170_v44 }
 0x37e   : > { %v1191_v60 = vmul.f32 %v1593_v2, %v1171_v9  ;;  %v1192_v61 = vmul.f32 %v1593_v2, %v1172_v46  ;;  %v1193_v62 = vmul.f32 %v1593_v2, %v1173_v47  ;;  %v1194_v63 = vmul.f32 %v1593_v2, %v1174_v28 }
 0x37f   : > { %v1195_v0 = vmul.f32 %v1593_v2, %v1175_v48  ;;  %v1196_v1 = vmul.f32 %v1593_v2, %v1176_v43  ;;  %v1197_v4 = vmul.f32 %v1593_v2, %v1177_v50  ;;  %v1198_v5 = vmul.f32 %v1593_v2, %v1178_v26  ;;  %1222 = sbr.rel (%p1595_p1) target bundleno = 910 (0x38e), region = 68 }
 0x380   : > { %v1203_v6 = vadd.f32 %v1594_v55, %v1183_v51  ;;  %v1204_v7 = vadd.f32 %v1594_v55, %v1184_v42  ;;  %v1205_v8 = vadd.f32 %v1594_v55, %v1185_v53  ;;  %v1206_v10 = vadd.f32 %v1594_v55, %v1186_v54 }
 0x381   : > { %v1207_v11 = vadd.f32 %v1594_v55, %v1187_v57  ;;  %v1208_v12 = vadd.f32 %v1594_v55, %v1188_v58  ;;  %v1209_v13 = vadd.f32 %v1594_v55, %v1189_v59  ;;  %v1210_v15 = vadd.f32 %v1594_v55, %v1190_v27 }
 0x382   : > { %v1211_v16 = vadd.f32 %v1594_v55, %v1191_v60  ;;  %v1212_v17 = vadd.f32 %v1594_v55, %v1192_v61  ;;  %v1213_v18 = vadd.f32 %v1594_v55, %v1193_v62  ;;  %v1214_v19 = vadd.f32 %v1594_v55, %v1194_v63 }
 0x383   : > { %v1215_v20 = vadd.f32 %v1594_v55, %v1195_v0  ;;  %v1216_v21 = vadd.f32 %v1594_v55, %v1196_v1  ;;  %v1217_v22 = vadd.f32 %v1594_v55, %v1197_v4  ;;  %v1218_v23 = vadd.f32 %v1594_v55, %v1198_v5 }
 0x384   : > { %v1223_v24 = vmax.f32 %v1203_v6, 0.0  ;;  %v1224_v25 = vmax.f32 %v1204_v7, 0.0  ;;  %v1225_v31 = vmax.f32 %v1205_v8, 0.0  ;;  %v1226_v33 = vmax.f32 %v1206_v10, 0.0 }
 0x385   : > { %v1227_v34 = vmax.f32 %v1207_v11, 0.0  ;;  %v1228_v36 = vmax.f32 %v1208_v12, 0.0  ;;  %v1229_v37 = vmax.f32 %v1209_v13, 0.0  ;;  %v1230_v32 = vmax.f32 %v1210_v15, 0.0 }
 0x386   : > { %v1703_v35 = vpack.c.bf16 %v1224_v25, %v1223_v24  ;;  %v1708_v30 = vpack.c.bf16 %v1226_v33, %v1225_v31  ;;  %v1231_v29 = vmax.f32 %v1211_v16, 0.0  ;;  %v1232_v45 = vmax.f32 %v1212_v17, 0.0 }
 0x387   : > { %v1713_v56 = vpack.c.bf16 %v1228_v36, %v1227_v34  ;;  %v1718_v38 = vpack.c.bf16 %v1230_v32, %v1229_v37  ;;  %v1233_v49 = vmax.f32 %v1213_v18, 0.0  ;;  %v1234_v39 = vmax.f32 %v1214_v19, 0.0 }
 0x388   : > { %1704 = vst [vmem:[#allocation11] sm:$0xff] %v1703_v35   ;;  %1787 = vst [vmem:[#allocation11 + $0x8] sm:$0xff] %v1708_v30   ;;  %v1723_v52 = vpack.c.bf16 %v1232_v45, %v1231_v29  ;;  %v1235_v40 = vmax.f32 %v1215_v20, 0.0  ;;  %v1236_v2 = vmax.f32 %v1216_v21, 0.0  ;;  %v1237_v41 = vmax.f32 %v1217_v22, 0.0 }
 0x389   : > { %1788 = vst [vmem:[#allocation11 + $0x10] sm:$0xff] %v1713_v56   ;;  %1789 = vst [vmem:[#allocation11 + $0x18] sm:$0xff] %v1718_v38   ;;  %v1728_v14 = vpack.c.bf16 %v1234_v39, %v1233_v49  ;;  %v1238_v3 = vmax.f32 %v1218_v23, 0.0 }
 0x38a   : > { %1790 = vst [vmem:[#allocation11 + $0x20] sm:$0xff] %v1723_v52   ;;  %v1733_v44 = vpack.c.bf16 %v1236_v2, %v1235_v40 }
 0x38b   : > { %1791 = vst [vmem:[#allocation11 + $0x28] sm:$0xff] %v1728_v14   ;;  %v1738_v9 = vpack.c.bf16 %v1238_v3, %v1237_v41 }
 0x38c   : > { %1792 = vst [vmem:[#allocation11 + $0x30] sm:$0xff] %v1733_v44  }
 0x38d   : > { %1793 = vst [vmem:[#allocation11 + $0x38] sm:$0xff] %v1738_v9  }
 0x38e PF: > { %p1612_p3 = scmp.ne.s32.totalorder %s2450_s6, 1 }
 0x390   : > { %1322 = sbr.rel (%p1612_p3) target bundleno = 923 (0x39b), region = 72 }
 0x395   : > { %v1743_v46 = vpack.c.bf16 %v1204_v7, %v1203_v6  ;;  %v1748_v47 = vpack.c.bf16 %v1206_v10, %v1205_v8  ;;  %v1753_v28 = vpack.c.bf16 %v1208_v12, %v1207_v11  ;;  %v1758_v48 = vpack.c.bf16 %v1210_v15, %v1209_v13 }
 0x396   : > { %v1763_v43 = vpack.c.bf16 %v1212_v17, %v1211_v16  ;;  %v1768_v50 = vpack.c.bf16 %v1214_v19, %v1213_v18  ;;  %v1773_v26 = vpack.c.bf16 %v1216_v21, %v1215_v20  ;;  %v1778_v51 = vpack.c.bf16 %v1218_v23, %v1217_v22 }
 0x397   : > { %1744 = vst [vmem:[#allocation11] sm:$0xff] %v1743_v46   ;;  %1794 = vst [vmem:[#allocation11 + $0x8] sm:$0xff] %v1748_v47  }
 0x398   : > { %1795 = vst [vmem:[#allocation11 + $0x10] sm:$0xff] %v1753_v28   ;;  %1796 = vst [vmem:[#allocation11 + $0x18] sm:$0xff] %v1758_v48  }
 0x399   : > { %1797 = vst [vmem:[#allocation11 + $0x20] sm:$0xff] %v1763_v43   ;;  %1798 = vst [vmem:[#allocation11 + $0x28] sm:$0xff] %v1768_v50  }
 0x39a   : > { %1799 = vst [vmem:[#allocation11 + $0x30] sm:$0xff] %v1773_v26   ;;  %1800 = vst [vmem:[#allocation11 + $0x38] sm:$0xff] %v1778_v51  }
 0x39b PF: > { %s2290_s8 = smov [#allocation11]  }
 0x39c   : > { %s1409_s28 = sshll.u32 %s2290_s8, 4  ;;  %s1410_s28 = int_to_ptr.vmem [resolvable:$true] %s1409_s28 }
 0x39d   : > { %s2210_s23 = scalar_lea.vmem %s1410_s28, 1024  ;;  %p2217_p13 = scmp.lt.s32.totalorder %s1410_s28, %s1410_s28 }
 0x39e   : > { %p2211_p6 = scmp.ne.s32.totalorder %s1410_s28, %s2210_s23  ;;  %p2218_p0 = scmp.lt.s32.totalorder %s2210_s23, %s2210_s23 }
 0x3a0   : > { %p2212_p10 = pnand %p2211_p6, %p1595_p1  ;;  %p2219_p4 = por %p2218_p0, %p2217_p13 }
 0x3a2   : > { %p2213_p11 = pneg %p2212_p10 }
 0x3a4   : > { %p2220_p8 = pnand %p2219_p4, %p2213_p11 }
 0x3a6   : > { %2223 = shalt.err (!%p2220_p8)
}
 0x3a7   : > { %s2291_s17 = smov 64   ;;  %s2292_s9 = smov 4  }
 0x3a8   : > { %1974 = dma.vmem_to_hbm [thread:$0]  (%p1595_p1), %s1410_s28, 1024, %s2738_s5, [#allocation4], %s2291_s17, %s2291_s17, %s2292_s9  }
 0x3a9   : > { %2263 = dma.done.wait (%p1595_p1), [#allocation4], 1024  }
 0x3aa   : > { %2265 = vsyncadd (%p1595_p1), [#allocation4], 4294966272 }
 0x3ab PF: > { %p20_p9 = scmp.ge.s32.totalorder %s2344_s22, 4   ;;  %s2766_s18 = smov %s2272_s19 }
 0x3ac   : > { %s2767_s19 = smov %s2276_s20  ;;  %s2768_s20 = smov %s2353_s25 }
 0x3ad   : > { %s2769_s21 = smov %s2344_s22  ;;  %22 = sbr.rel (!%p20_p9) target bundleno = 10 (0xa), region = 129 }
 0x3b2   :  { %1425 = vsyncpa [#allocation3], 1 }
 0x3b3   :  { %1427 = vsyncpa [#allocation3 + $0x1], 1 }
 0x3b4   :  { %1428 = vsyncpa [#allocation6], 1 }
 0x3b5   :  { %1430 = vsyncpa [#allocation6 + $0x1], 1 }
 0x3b6   :  { %1431 = vsyncpa [#allocation9], 1 }
 0x3b7   :  { %1433 = vsyncpa [#allocation9 + $0x1], 1 }
 0x3b8   :  { %1434 = vsyncpa [#allocation4], 1 }
 0x3b9   :  { %1436 = vsyncpa [#allocation4 + $0x1], 1 }

</bundles_post_ra>
